<compile_context>
chip_gen: v6e
topology: v6e:2x2x1
jax: 0.10.0
libtpu: 0.0.40
codegen_flags: <defaults>
</compile_context>

<pallas_src>
import functools

import jax
import jax.numpy as jnp
from jax.experimental import pallas as pl
from jax.experimental.pallas import tpu as pltpu

_LANE = 128


def _round_up(v, m):
    return ((v + m - 1) // m) * m


def _se_kernel(x_ref, w1t_ref, b1_ref, w2t_ref, b2_ref, o_ref, acc_ref, *, inv_hw):
    # x_ref:   (B, C, TILE_HW)  streamed spatial tile (grid axis 0, "arbitrary")
    # w1t_ref: (C, Cr)   b1_ref: (1, Cr)
    # w2t_ref: (Cr, C)   b2_ref: (1, C)
    # o_ref:   (B, C)    acc_ref: (B, C, 128) f32 lane-wide partial sums
    k = pl.program_id(0)

    @pl.when(k == 0)
    def _init():
        acc_ref[...] = jnp.zeros_like(acc_ref)

    # --- squeeze (partial): accumulate 128-lane chunks with VPU adds only ---
    x = x_ref[...]
    n_chunks = x.shape[-1] // _LANE
    partial = x[:, :, 0:_LANE].astype(jnp.float32)
    for j in range(1, n_chunks):
        partial = partial + x[:, :, j * _LANE:(j + 1) * _LANE].astype(jnp.float32)
    acc_ref[...] += partial

    @pl.when(k == pl.num_programs(0) - 1)
    def _epilogue():
        # Single cross-lane reduce + normalize by the true H*W.
        pooled = jnp.sum(acc_ref[...], axis=-1) * inv_hw               # (B, C)

        # compress: 1x1 conv == channel matmul, then ReLU
        h = jnp.dot(pooled, w1t_ref[...],
                    preferred_element_type=jnp.float32) + b1_ref[...]  # (B, Cr)
        h = jnp.maximum(h, 0.0)

        # excitation: 1x1 conv == channel matmul, then sigmoid
        y = jnp.dot(h, w2t_ref[...],
                    preferred_element_type=jnp.float32) + b2_ref[...]  # (B, C)
        y = jax.nn.sigmoid(y)

        o_ref[...] = y.astype(o_ref.dtype)


def se_block_pallas(x_nchw, w1, b1, w2, b2, *,
                    max_tile_hw=2048,
                    per_buffer_budget_bytes=8 * 1024 * 1024):
    """x_nchw: (B, C, H, W); w1: (Cr, C); b1: (Cr,); w2: (C, Cr); b2: (C,).

    Returns (B, C, 1, 1) attention weights (matches the PyTorch SEblock.forward).
    """
    B, C, H, W = x_nchw.shape
    Cr = w1.shape[0]
    HW = H * W
    itemsize = jnp.dtype(x_nchw.dtype).itemsize

    # Lane-dense spatial tile: multiple of 128, capped by max_tile_hw and by a
    # per-buffer VMEM budget (block bytes = B*C*TILE_HW*itemsize, double-buffered).
    hw_min_pad = _round_up(HW, _LANE)
    budget_lanes = max(_LANE,
                       (per_buffer_budget_bytes // (B * C * itemsize)) // _LANE * _LANE)
    tile_hw = min(hw_min_pad, max_tile_hw, budget_lanes)
    hw_pad = _round_up(HW, tile_hw)
    num_tiles = hw_pad // tile_hw

    x_flat = x_nchw.reshape(B, C, HW)
    if hw_pad != HW:
        # Zero padding is harmless: we accumulate sums and divide by true HW.
        x_flat = jnp.pad(x_flat, ((0, 0), (0, 0), (0, hw_pad - HW)))

    # Pre-transpose weights in the wrapper (free layout plumbing, no in-kernel .T).
    w1t = jnp.transpose(w1)          # (C, Cr)
    w2t = jnp.transpose(w2)          # (Cr, C)
    b1_2d = b1.reshape(1, Cr)
    b2_2d = b2.reshape(1, C)

    cost = pl.CostEstimate(
        flops=int(B * C * HW + 2 * B * C * Cr * 2),      # pooling adds + two tiny matmuls
        transcendentals=int(B * C),                      # sigmoid
        bytes_accessed=int(B * C * HW * itemsize
                           + (2 * C * Cr + C + Cr) * 4
                           + B * C * itemsize),
    )

    kernel = functools.partial(_se_kernel, inv_hw=1.0 / float(HW))

    out = pl.pallas_call(
        kernel,
        out_shape=jax.ShapeDtypeStruct((B, C), x_nchw.dtype),
        grid=(num_tiles,),
        in_specs=[
            pl.BlockSpec((B, C, tile_hw), lambda k: (0, 0, k)),   # streamed x tiles
            pl.BlockSpec((C, Cr), lambda k: (0, 0)),              # VMEM-resident weights
            pl.BlockSpec((1, Cr), lambda k: (0, 0)),
            pl.BlockSpec((Cr, C), lambda k: (0, 0)),
            pl.BlockSpec((1, C), lambda k: (0, 0)),
        ],
        out_specs=pl.BlockSpec((B, C), lambda k: (0, 0)),         # resident accumulator output
        scratch_shapes=[pltpu.VMEM((B, C, _LANE), jnp.float32)],
        compiler_params=pltpu.CompilerParams(
            dimension_semantics=("arbitrary",),        # spatial reduction axis
            vmem_limit_bytes=32 * 1024 * 1024,         # stays within v7x budget too
        ),
        cost_estimate=cost,
    )(x_flat, w1t, b1_2d, w2t, b2_2d)

    return out.reshape(B, C, 1, 1)


def _reference(x_nchw, w1, b1, w2, b2):
    pooled = jnp.mean(x_nchw, axis=(2, 3))                    # (B, C)
    h = jnp.maximum(pooled @ w1.T + b1, 0.0)                  # (B, Cr)
    y = jax.nn.sigmoid(h @ w2.T + b2)                         # (B, C)
    return y[:, :, None, None]


if __name__ == "__main__":
    B, C, H, W = 2, 4, 16, 16
    ratio = 2
    Cr = C // ratio

    key = jax.random.PRNGKey(0)
    kx, k1, k2, k3, k4 = jax.random.split(key, 5)

    x = jax.random.normal(kx, (B, C, H, W), dtype=jnp.float32)

    # Deterministic parameter init (mimics Conv2d uniform bounds, 1x1 kernels).
    bound1 = 1.0 / (C ** 0.5)
    w1 = jax.random.uniform(k1, (Cr, C), jnp.float32, -bound1, bound1)
    b1 = jax.random.uniform(k2, (Cr,), jnp.float32, -bound1, bound1)
    bound2 = 1.0 / (Cr ** 0.5)
    w2 = jax.random.uniform(k3, (C, Cr), jnp.float32, -bound2, bound2)
    b2 = jax.random.uniform(k4, (C,), jnp.float32, -bound2, bound2)

    out = se_block_pallas(x, w1, b1, w2, b2)
    out = jax.block_until_ready(out)

    ref = _reference(x, w1, b1, w2, b2)
    assert out.shape == (B, C, 1, 1), out.shape
    assert jnp.allclose(out, ref, atol=1e-5, rtol=1e-5), "mismatch vs reference"

    print("KERNEL_OK")
</pallas_src>

<mosaic_0001>
module attributes {stable_mosaic.version = 11 : i64} {
  func.func @_se_kernel(%arg0: i32, %arg1: memref<2x4x256xf32, #tpu.memory_space<vmem>>, %arg2: memref<4x2xf32, #tpu.memory_space<vmem>>, %arg3: memref<1x2xf32, #tpu.memory_space<vmem>>, %arg4: memref<2x4xf32, #tpu.memory_space<vmem>>, %arg5: memref<1x4xf32, #tpu.memory_space<vmem>>, %arg6: memref<2x4xf32, #tpu.memory_space<vmem>>, %arg7: memref<2x4x128xf32, #tpu.memory_space<vmem>>) attributes {dimension_semantics = [#tpu.dimension_semantics<arbitrary>], iteration_bounds = array<i64: 1>, scalar_prefetch = 0 : i64, scratch_operands = 1 : i64, tpu.core_type = #tpu.core_type<tc>, window_params = [{transform_indices = @transform_0, window_bounds = array<i64: 2, 4, 256>}, {pipeline_mode = #tpu.pipeline_mode<synchronous>, transform_indices = @transform_1, window_bounds = array<i64: 4, 2>}, {pipeline_mode = #tpu.pipeline_mode<synchronous>, transform_indices = @transform_2, window_bounds = array<i64: 1, 2>}, {pipeline_mode = #tpu.pipeline_mode<synchronous>, transform_indices = @transform_3, window_bounds = array<i64: 2, 4>}, {pipeline_mode = #tpu.pipeline_mode<synchronous>, transform_indices = @transform_4, window_bounds = array<i64: 1, 4>}, {pipeline_mode = #tpu.pipeline_mode<synchronous>, transform_indices = @transform_5, window_bounds = array<i64: 2, 4>}]} {
    %c0_i32 = arith.constant 0 : i32
    %0 = arith.cmpi eq, %arg0, %c0_i32 : i32
    %1 = arith.extui %0 : i1 to i32
    %c0_i32_0 = arith.constant 0 : i32
    %2 = arith.cmpi ne, %1, %c0_i32_0 : i32
    scf.if %2 {
      %cst = arith.constant 0.000000e+00 : f32
      %13 = vector.broadcast %cst : f32 to vector<2x4x128xf32>
      %c0_11 = arith.constant 0 : index
      %c0_12 = arith.constant 0 : index
      %c0_13 = arith.constant 0 : index
      %14 = vector.load %arg7[%c0_11, %c0_12, %c0_13] : memref<2x4x128xf32, #tpu.memory_space<vmem>>, vector<2x4x128xf32>
      tpu.vector_store %arg7[%c0_11, %c0_12, %c0_13], %13 {strides = array<i32>} : memref<2x4x128xf32, #tpu.memory_space<vmem>>, vector<2x4x128xf32>,
    } else {
    }
    %c0 = arith.constant 0 : index
    %c0_1 = arith.constant 0 : index
    %c0_2 = arith.constant 0 : index
    %3 = vector.load %arg1[%c0, %c0_1, %c0_2] : memref<2x4x256xf32, #tpu.memory_space<vmem>>, vector<2x4x256xf32>
    %4 = vector.extract_strided_slice %3 {offsets = [0, 0, 0], sizes = [2, 4, 128], strides = [1, 1, 1]} : vector<2x4x256xf32> to vector<2x4x128xf32>
    %5 = vector.extract_strided_slice %3 {offsets = [0, 0, 128], sizes = [2, 4, 128], strides = [1, 1, 1]} : vector<2x4x256xf32> to vector<2x4x128xf32>
    %6 = arith.addf %4, %5 : vector<2x4x128xf32>
    %c0_3 = arith.constant 0 : index
    %c0_4 = arith.constant 0 : index
    %c0_5 = arith.constant 0 : index
    %7 = vector.load %arg7[%c0_3, %c0_4, %c0_5] : memref<2x4x128xf32, #tpu.memory_space<vmem>>, vector<2x4x128xf32>
    %8 = arith.addf %7, %6 : vector<2x4x128xf32>
    %c0_6 = arith.constant 0 : index
    %c0_7 = arith.constant 0 : index
    %c0_8 = arith.constant 0 : index
    %9 = vector.load %arg7[%c0_6, %c0_7, %c0_8] : memref<2x4x128xf32, #tpu.memory_space<vmem>>, vector<2x4x128xf32>
    tpu.vector_store %arg7[%c0_6, %c0_7, %c0_8], %8 {strides = array<i32>} : memref<2x4x128xf32, #tpu.memory_space<vmem>>, vector<2x4x128xf32>,
    %c0_i32_9 = arith.constant 0 : i32
    %10 = arith.cmpi eq, %arg0, %c0_i32_9 : i32
    %11 = arith.extui %10 : i1 to i32
    %c0_i32_10 = arith.constant 0 : i32
    %12 = arith.cmpi ne, %11, %c0_i32_10 : i32
    scf.if %12 {
      %c0_11 = arith.constant 0 : index
      %c0_12 = arith.constant 0 : index
      %c0_13 = arith.constant 0 : index
      %13 = vector.load %arg7[%c0_11, %c0_12, %c0_13] : memref<2x4x128xf32, #tpu.memory_space<vmem>>, vector<2x4x128xf32>
      %cst = arith.constant dense<0.000000e+00> : vector<2x4xf32>
      %14 = vector.multi_reduction <add>, %13, %cst [2] : vector<2x4x128xf32> to vector<2x4xf32>
      %cst_14 = arith.constant 3.906250e-03 : f32
      %15 = vector.broadcast %cst_14 : f32 to vector<2x4xf32>
      %16 = arith.mulf %14, %15 : vector<2x4xf32>
      %c0_15 = arith.constant 0 : index
      %c0_16 = arith.constant 0 : index
      %17 = vector.load %arg2[%c0_15, %c0_16] : memref<4x2xf32, #tpu.memory_space<vmem>>, vector<4x2xf32>
      %cst_17 = arith.constant dense<0.000000e+00> : vector<2x2xf32>
      %18 = tpu.matmul %16, %17, %cst_17 {dimension_numbers = #tpu.dot_dimension_numbers<[1], [0], [0], [1], [0, 0, 1, 1], [], []>} : vector<2x4xf32>, vector<4x2xf32>, vector<2x2xf32> -> vector<2x2xf32>
      %c0_18 = arith.constant 0 : index
      %c0_19 = arith.constant 0 : index
      %19 = vector.load %arg3[%c0_18, %c0_19] : memref<1x2xf32, #tpu.memory_space<vmem>>, vector<1x2xf32>
      %20 = vector.broadcast %19 : vector<1x2xf32> to vector<2x2xf32>
      %21 = arith.addf %18, %20 : vector<2x2xf32>
      %cst_20 = arith.constant 0.000000e+00 : f32
      %22 = vector.broadcast %cst_20 : f32 to vector<2x2xf32>
      %23 = arith.maximumf %21, %22 : vector<2x2xf32>
      %c0_21 = arith.constant 0 : index
      %c0_22 = arith.constant 0 : index
      %24 = vector.load %arg4[%c0_21, %c0_22] : memref<2x4xf32, #tpu.memory_space<vmem>>, vector<2x4xf32>
      %cst_23 = arith.constant dense<0.000000e+00> : vector<2x4xf32>
      %25 = tpu.matmul %23, %24, %cst_23 {dimension_numbers = #tpu.dot_dimension_numbers<[1], [0], [0], [1], [0, 0, 1, 1], [], []>} : vector<2x2xf32>, vector<2x4xf32>, vector<2x4xf32> -> vector<2x4xf32>
      %c0_24 = arith.constant 0 : index
      %c0_25 = arith.constant 0 : index
      %26 = vector.load %arg5[%c0_24, %c0_25] : memref<1x4xf32, #tpu.memory_space<vmem>>, vector<1x4xf32>
      %27 = vector.broadcast %26 : vector<1x4xf32> to vector<2x4xf32>
      %28 = arith.addf %25, %27 : vector<2x4xf32>
      %29 = arith.negf %28 : vector<2x4xf32>
      %30 = math.exp %29 : vector<2x4xf32>
      %cst_26 = arith.constant 1.000000e+00 : f32
      %31 = vector.broadcast %cst_26 : f32 to vector<2x4xf32>
      %32 = arith.addf %31, %30 : vector<2x4xf32>
      %33 = arith.divf %31, %32 : vector<2x4xf32>
      %c0_27 = arith.constant 0 : index
      %c0_28 = arith.constant 0 : index
      %34 = vector.load %arg6[%c0_27, %c0_28] : memref<2x4xf32, #tpu.memory_space<vmem>>, vector<2x4xf32>
      tpu.vector_store %arg6[%c0_27, %c0_28], %33 {strides = array<i32>} : memref<2x4xf32, #tpu.memory_space<vmem>>, vector<2x4xf32>,
    } else {
    }
    return
  }
  func.func @transform_0(%arg0: i32) -> (i32, i32, i32) {
    %c0_i32 = arith.constant 0 : i32
    %c0_i32_0 = arith.constant 0 : i32
    %c0_i32_1 = arith.constant 0 : i32
    return %c0_i32, %c0_i32_0, %arg0 : i32, i32, i32
  }
  func.func @transform_1(%arg0: i32) -> (i32, i32) {
    %c0_i32 = arith.constant 0 : i32
    %c0_i32_0 = arith.constant 0 : i32
    %c0_i32_1 = arith.constant 0 : i32
    return %c0_i32, %c0_i32_0 : i32, i32
  }
  func.func @transform_2(%arg0: i32) -> (i32, i32) {
    %c0_i32 = arith.constant 0 : i32
    %c0_i32_0 = arith.constant 0 : i32
    %c0_i32_1 = arith.constant 0 : i32
    return %c0_i32, %c0_i32_0 : i32, i32
  }
  func.func @transform_3(%arg0: i32) -> (i32, i32) {
    %c0_i32 = arith.constant 0 : i32
    %c0_i32_0 = arith.constant 0 : i32
    %c0_i32_1 = arith.constant 0 : i32
    return %c0_i32, %c0_i32_0 : i32, i32
  }
  func.func @transform_4(%arg0: i32) -> (i32, i32) {
    %c0_i32 = arith.constant 0 : i32
    %c0_i32_0 = arith.constant 0 : i32
    %c0_i32_1 = arith.constant 0 : i32
    return %c0_i32, %c0_i32_0 : i32, i32
  }
  func.func @transform_5(%arg0: i32) -> (i32, i32) {
    %c0_i32 = arith.constant 0 : i32
    %c0_i32_0 = arith.constant 0 : i32
    %c0_i32_1 = arith.constant 0 : i32
    return %c0_i32, %c0_i32_0 : i32, i32
  }
}

</mosaic_0001>

<bundles_post_ra>
// kernel: tpu_custom_call.1
= control target key start
LH: loop header
LB: loop body
LE: loop exit
PB: predicated region body
PF: predicated region fallthrough
CT: control target
= control target key end

     0   :  { %10 = vsyncpa [#allocation4], 0  ;;  %s408_s0 = inlined_call_operand.hbm [shape: f32[2,4,256], index: 0, kind: input, shape index: {}]   ;;  %s409_s1 = inlined_call_operand.vmem [shape: f32[4,2], index: 1, kind: input, shape index: {}]   ;;  %s410_s2 = inlined_call_operand.vmem [shape: f32[1,2], index: 2, kind: input, shape index: {}]   ;;  %s411_s3 = inlined_call_operand.vmem [shape: f32[2,4], index: 3, kind: input, shape index: {}]   ;;  %s412_s4 = inlined_call_operand.vmem [shape: f32[1,4], index: 4, kind: input, shape index: {}]   ;;  %s413_s5 = inlined_call_operand.hbm [shape: f32[2,4], index: 5, kind: output, shape index: {}]  }
   0x1   :  { %11 = vsyncpa [#allocation5], 0  ;;  %s354_s18 = smov [#allocation3]  }
   0x2   :  { %s17_s19 = sshll.u32 %s354_s18, 4  ;;  %s18_s19 = int_to_ptr.vmem [resolvable:$true] %s17_s19 }
   0x3   :  { %s318_s20 = scalar_lea.vmem %s18_s19, 256  ;;  %p323_p1 = scmp.lt.s32.totalorder %s18_s19, %s18_s19 }
   0x4   :  { %p319_p0 = scmp.ne.s32.totalorder %s18_s19, %s318_s20  ;;  %p324_p2 = scmp.lt.s32.totalorder %s318_s20, %s318_s20 }
   0x6   :  { %p325_p3 = por %p324_p2, %p323_p1 }
   0x8   :  { %p326_p4 = pnand %p325_p3, %p319_p0 }
   0xa   :  { %329 = shalt.err (!%p326_p4)
}
   0xb   :  { %s355_s21 = smov 128   ;;  %s356_s22 = smov 8  }
   0xc   :  { %23 = dma.hbm_to_vmem [thread:$0]  %s408_s0, 256, %s18_s19, [#allocation4], %s355_s21, %s355_s21, %s356_s22  }
   0xd   :  { %350 = dma.done.wait [#allocation4], 256  }
   0xe   :  { %351 = vsyncadd [#allocation4], 4294967040  ;;  %v357_v0 = vmov 0.0   ;;  %v41_v1 = vld [vmem:[#allocation3] sm:$0xff]  ;;  %v42_v2 = vld [vmem:[#allocation3 + $0x8] sm:$0xff]  ;;  %vm62_vm0 = vcmask 1043456   ;;  %v81_v16 = vlaneseq }
   0xf   :  { %39 = vst [vmem:[#allocation2] sm:$0xf] %v357_v0  ;;  %40 = vst [vmem:[#allocation2 + $0x4] sm:$0xf] %v357_v0  ;;  %290 = vmatprep.subr.mxu0 %v357_v0  ;;  %295 = vmatprep.subr.mxu1 %v357_v0  ;;  %v45_v3 = vrot.slane %v41_v1, 4  ;;  %v46_v4 = vrot.slane %v42_v2, 4 }
  0x10   :  { %v71_v15 = vld [vmem:[%s409_s1] sm:$0xf]  ;;  %vm358_vm1 = vmmov 0   ;;  %v82_v17 = vand.u32 127, %v81_v16  ;;  %v84_v18 = vshrl.u32 %v81_v16, 7  ;;  %vm91_vm2 = vcmask 1041409  }
  0x11   :  { %v49_v7 = vadd.f32 %v45_v3, %v41_v1  ;;  %v50_v8 = vadd.f32 %v46_v4, %v42_v2  ;;  %291 = vmatpush3.msk.msra.mxu0 %vm62_vm0, %v71_v15  ;;  %292 = vmatprep.mubr.msk.f32.mxu0 %vm358_vm1, %v357_v0  ;;  %vm93_vm3 = vcmask 31744   ;;  %v170_v27 = vld [vmem:[%s411_s3] sm:$0x3]  ;;  %vm182_vm4 = vcmask 1041408   ;;  %s359_s3 = smov [#allocation6]  }
  0x12   :  { %297 = vmatprep.mubr.msk.f32.mxu1 %vm358_vm1, %v357_v0  ;;  %v85_v20 = vsub.s32 %v82_v17, %v84_v18  ;;  %296 = vmatpush3.msk.msra.mxu1 %vm182_vm4, %v170_v27  ;;  %v279_v28 = vld [vmem:[%s410_s2] ss:$0 sm:$0xff]  ;;  %vm178_vm5 = vcmask 15360   ;;  %s270_s2 = sshll.u32 %s359_s3, 4  ;;  %vm262_vm6 = vcmask 25600   ;;  %s271_s2 = int_to_ptr.vmem [resolvable:$true] %s270_s2 }
  0x13   :  { %v282_v33 = vld [vmem:[%s412_s4] ss:$0 sm:$0xff]  ;;  %s330_s6 = scalar_lea.vmem %s271_s2, 32  ;;  %p335_p6 = scmp.lt.s32.totalorder %s271_s2, %s271_s2 }
  0x14   :  { %p331_p5 = scmp.ne.s32.totalorder %s271_s2, %s330_s6  ;;  %p336_p7 = scmp.lt.s32.totalorder %s330_s6, %s330_s6 }
  0x16   :  { %v51_v5 = vld [vmem:[#allocation2] sm:$0xf]  ;;  %v52_v6 = vld [vmem:[#allocation2 + $0x4] sm:$0xf]  ;;  %p337_p8 = por %p336_p7, %p335_p6 }
  0x17   :  { %v53_v9 = vadd.f32 %v51_v5, %v49_v7  ;;  %v54_v10 = vadd.f32 %v52_v6, %v50_v8 }
  0x18   :  { %p338_p9 = pnand %p337_p8, %p331_p5 }
  0x19   :  { %55 = vst [vmem:[#allocation2] sm:$0xf] %v53_v9  ;;  %56 = vst [vmem:[#allocation2 + $0x4] sm:$0xf] %v54_v10 }
  0x20   :  { %v60_v11 = vld [vmem:[#allocation2] sm:$0xf]  ;;  %v61_v12 = vld [vmem:[#allocation2 + $0x4] sm:$0xf] }
  0x21   :  { %v63_v13 = vsel %vm62_vm0, %v60_v11, 0.0  ;;  %v66_v14 = vsel %vm62_vm0, %v61_v12, 0.0 }
  0x22   :  { %64 = vadd.xlane.f32.xlu0 %v63_v13 }
  0x26   :  { %67 = vadd.xlane.f32.xlu0 %v66_v14 }
  0xab   :  { %v65_v19 = vpop.xlane.xlu0 %64 }
  0xac   :  { %v69_v21 = vmul.f32 0.00390625, %v65_v19 }
  0xae   :  { %v86_v24 = vrot.slane %v69_v21, %v85_v20 }
  0xaf   :  { %v68_v22 = vpop.xlane.xlu0 %67 }
  0xb0   :  { %v70_v23 = vmul.f32 0.00390625, %v68_v22 }
  0xb2   :  { %v90_v25 = vrot.slane %v70_v23, %v85_v20 }
  0xb4   :  { %v92_v26 = vsel %vm91_vm2, %v90_v25, %v86_v24 }
  0xb5   :  { %293 = vmatmul.mubr.msk.f32.vlgmr.msra.gmra.mxu0 %vm93_vm3, %v92_v26 }
 0x175   :  { %v165_v29 = vpop.f32.mrf.mxu0 }
 0x176   :  { %v166_v30 = vadd.f32 %v279_v28, %v165_v29 }
 0x177   :  { %v294_v31 = vpop.f32.mrf.mxu0 }
 0x178   :  { %v169_v32 = vmax.f32 %v166_v30, 0.0 }
 0x17a   :  { %298 = vmatmul.mubr.msk.f32.vlgmr.msra.gmra.mxu1 %vm178_vm5, %v169_v32 }
 0x23a   :  { %v252_v34 = vpop.f32.mrf.mxu1 }
 0x23b   :  { %v253_v35 = vadd.f32 %v282_v33, %v252_v34 }
 0x23c   :  { %v299_v36 = vpop.f32.mrf.mxu1 }
 0x23d   :  { %v285_v37 = vmul.f32 -1.442695, %v253_v35 }
 0x23f   :  { %306 = vpow2.f32 %v285_v37 }
 0x24c   :  { %v307_v38 = vpop.eup %306 }
 0x24d   :  { %v259_v39 = vadd.f32 1.0, %v307_v38 }
 0x24f   :  { %308 = vrcp.f32 %v259_v39 }
 0x25c   :  { %v309_v40 = vpop.eup %308 }
 0x25d   :  { %263 = vst.msk [vmem:[#allocation6] sm:$0x3] %vm262_vm6, %v309_v40 }
 0x25e   :  { %341 = shalt.err (!%p338_p9)
}
 0x25f   :  { %273 = dma.vmem_to_hbm [thread:$0]  %s271_s2, 32, %s413_s5, [#allocation5]  }
 0x260   :  { %352 = dma.done.wait [#allocation5], 32  }
 0x261   :  { %353 = vsyncadd [#allocation5], 4294967264 }
 0x262   :  { %277 = vsyncpa [#allocation4], 1 }
 0x263   :  { %278 = vsyncpa [#allocation5], 1 }

</bundles_post_ra>
